<compile_context>
chip_gen: v7x
topology: tpu7x:2x2x1
jax: 0.10.0
libtpu: 0.0.40
codegen_flags: <defaults>
</compile_context>

<pallas_src>
import jax
import jax.numpy as jnp
from jax.experimental import pallas as pl
from jax.experimental.pallas import tpu as pltpu

NEG_SLOPE = 0.01  # nn.LeakyReLU default


def _leaky_relu(x):
    return jnp.where(x > 0, x, NEG_SLOPE * x)


def _fold_kernel(x_ref,
                 w1_ref, b1_ref, w2_ref, b2_ref,
                 w3_ref, b3_ref, w4_ref, b4_ref,
                 out_ref, *maybe_code_ref):
    """One (batch, N-tile) block: x (1, C_in, Tn) -> out (1, out_dim, Tn)."""
    x = x_ref[0]                                   # (C_in, Tn), N on lanes
    cdt = x.dtype                                  # compute dtype for MXU feeds

    h = jnp.dot(w1_ref[...], x, preferred_element_type=jnp.float32)
    h = _leaky_relu(h + b1_ref[...]).astype(cdt)

    h = jnp.dot(w2_ref[...], h, preferred_element_type=jnp.float32)
    h = _leaky_relu(h + b2_ref[...]).astype(cdt)

    h = jnp.dot(w3_ref[...], h, preferred_element_type=jnp.float32)
    h = _leaky_relu(h + b3_ref[...]).astype(cdt)   # == "code"

    y = jnp.dot(w4_ref[...], h, preferred_element_type=jnp.float32) + b4_ref[...]
    out_ref[0] = y.astype(out_ref.dtype)

    if maybe_code_ref:                             # return_code=True path
        maybe_code_ref[0][0] = h.astype(maybe_code_ref[0].dtype)


def _choose_tile_n(n, cap=1024):
    """Largest multiple-of-128 divisor of n that is <= cap.  If n is not
    128-aligned, fall back to a whole-N block (a full-dim block is always
    legal and avoids masked edge tiles, e.g. FoldingNet's N = 45*45)."""
    if n % 128 != 0:
        return n
    t = min(cap, n)
    t -= t % 128
    t = max(t, 128)
    while n % t != 0:
        t -= 128
    return t


def folding_net_dec_fold(x_ncl, params, *, return_code=False, tile_n=None):
    """x_ncl: (B, C_in, N) (PyTorch NCL).  Returns (B, out_dim, N) and, if
    return_code, also the (B, hidden, N) activations after conv3."""
    (w1, b1), (w2, b2), (w3, b3), (w4, b4) = params
    B, C_in, N = x_ncl.shape
    H = w1.shape[0]
    out_dim = w4.shape[0]

    if tile_n is None:
        tile_n = _choose_tile_n(N)
    assert N % tile_n == 0, "tile_n must divide N"
    n_tiles = N // tile_n

    const = lambda shape: pl.BlockSpec(shape, lambda b, n: tuple(0 for _ in shape))

    in_specs = [
        pl.BlockSpec((1, C_in, tile_n), lambda b, n: (b, 0, n)),
        const((H, C_in)),    const((H, 1)),
        const((H, H)),       const((H, 1)),
        const((H, H)),       const((H, 1)),
        const((out_dim, H)), const((out_dim, 1)),
    ]
    out_specs = pl.BlockSpec((1, out_dim, tile_n), lambda b, n: (b, 0, n))
    out_shape = jax.ShapeDtypeStruct((B, out_dim, N), x_ncl.dtype)
    if return_code:
        out_specs = [out_specs,
                     pl.BlockSpec((1, H, tile_n), lambda b, n: (b, 0, n))]
        out_shape = (out_shape, jax.ShapeDtypeStruct((B, H, N), x_ncl.dtype))

    return pl.pallas_call(
        _fold_kernel,
        out_shape=out_shape,
        grid_spec=pltpu.PrefetchScalarGridSpec(
            num_scalar_prefetch=0,
            grid=(B, n_tiles),
            in_specs=in_specs,
            out_specs=out_specs,
        ),
        compiler_params=pltpu.CompilerParams(
            dimension_semantics=("parallel", "parallel"),
            vmem_limit_bytes=32 * 1024 * 1024,
        ),
    )(x_ncl, w1, b1, w2, b2, w3, b3, w4, b4)


def init_params(key, input_features, point_dim, hidden_size):
    """Synthetic Conv1d parameters in native PyTorch orientation:
    W: (out_ch, in_ch) (kernel_size=1 squeezed), b: (out_ch, 1)."""
    c_in = input_features + point_dim[0]
    dims = [(hidden_size, c_in),
            (hidden_size, hidden_size),
            (hidden_size, hidden_size),
            (point_dim[1], hidden_size)]
    params = []
    for out_ch, in_ch in dims:
        key, kw, kb = jax.random.split(key, 3)
        bound = 1.0 / jnp.sqrt(in_ch)
        w = jax.random.uniform(kw, (out_ch, in_ch), jnp.float32, -bound, bound)
        b = jax.random.uniform(kb, (out_ch, 1), jnp.float32, -bound, bound)
        params.append((w, b))
    return params


def _reference(x_ncl, params, return_code=False):
    """Pure-JAX reference matching the PyTorch forward (NCL layout)."""
    (w1, b1), (w2, b2), (w3, b3), (w4, b4) = params
    h = _leaky_relu(jnp.einsum('oc,bcn->bon', w1, x_ncl) + b1[None])
    h = _leaky_relu(jnp.einsum('oc,bcn->bon', w2, h) + b2[None])
    h = _leaky_relu(jnp.einsum('oc,bcn->bon', w3, h) + b3[None])
    y = jnp.einsum('oc,bcn->bon', w4, h) + b4[None]
    return (y, h) if return_code else y


if __name__ == "__main__":
    # Small shapes consistent with the module.
    B = 2
    input_features = 16
    point_dim = [2, 3]
    hidden_size = 32
    N = 256                       # number of points; tiled as 2 x 128 lanes

    key = jax.random.PRNGKey(0)
    key, kx = jax.random.split(key)
    params = init_params(key, input_features, point_dim, hidden_size)

    # PyTorch-style NCL input: (B, input_features + point_dim[0], N)
    x = jax.random.normal(kx, (B, input_features + point_dim[0], N), jnp.float32)

    # Default path (return_code=False).
    y = folding_net_dec_fold(x, params, tile_n=128)
    y = jax.block_until_ready(y)
    y_ref = _reference(x, params)
    assert y.shape == (B, point_dim[1], N)
    assert jnp.allclose(y, y_ref, atol=1e-5, rtol=1e-5)

    # return_code=True path (second output = activations after conv3).
    y2, code = folding_net_dec_fold(x, params, return_code=True, tile_n=128)
    jax.block_until_ready((y2, code))
    y_ref2, code_ref = _reference(x, params, return_code=True)
    assert code.shape == (B, hidden_size, N)
    assert jnp.allclose(y2, y_ref2, atol=1e-5, rtol=1e-5)
    assert jnp.allclose(code, code_ref, atol=1e-5, rtol=1e-5)

    print("KERNEL_OK")
</pallas_src>

<mosaic_0001>
module attributes {stable_mosaic.version = 11 : i64} {
  func.func @_fold_kernel(%arg0: i32, %arg1: i32, %arg2: memref<1x18x128xf32, #tpu.memory_space<vmem>>, %arg3: memref<32x18xf32, #tpu.memory_space<vmem>>, %arg4: memref<32x1xf32, #tpu.memory_space<vmem>>, %arg5: memref<32x32xf32, #tpu.memory_space<vmem>>, %arg6: memref<32x1xf32, #tpu.memory_space<vmem>>, %arg7: memref<32x32xf32, #tpu.memory_space<vmem>>, %arg8: memref<32x1xf32, #tpu.memory_space<vmem>>, %arg9: memref<3x32xf32, #tpu.memory_space<vmem>>, %arg10: memref<3x1xf32, #tpu.memory_space<vmem>>, %arg11: memref<1x3x128xf32, #tpu.memory_space<vmem>>) attributes {dimension_semantics = [#tpu.dimension_semantics<parallel>, #tpu.dimension_semantics<parallel>], iteration_bounds = array<i64: 2, 2>, scalar_prefetch = 0 : i64, scratch_operands = 0 : i64, tpu.core_type = #tpu.core_type<tc>, window_params = [{transform_indices = @transform_0, window_bounds = array<i64: 1, 18, 128>}, {pipeline_mode = #tpu.pipeline_mode<synchronous>, transform_indices = @transform_1, window_bounds = array<i64: 32, 18>}, {pipeline_mode = #tpu.pipeline_mode<synchronous>, transform_indices = @transform_2, window_bounds = array<i64: 32, 1>}, {pipeline_mode = #tpu.pipeline_mode<synchronous>, transform_indices = @transform_3, window_bounds = array<i64: 32, 32>}, {pipeline_mode = #tpu.pipeline_mode<synchronous>, transform_indices = @transform_4, window_bounds = array<i64: 32, 1>}, {pipeline_mode = #tpu.pipeline_mode<synchronous>, transform_indices = @transform_5, window_bounds = array<i64: 32, 32>}, {pipeline_mode = #tpu.pipeline_mode<synchronous>, transform_indices = @transform_6, window_bounds = array<i64: 32, 1>}, {pipeline_mode = #tpu.pipeline_mode<synchronous>, transform_indices = @transform_7, window_bounds = array<i64: 3, 32>}, {pipeline_mode = #tpu.pipeline_mode<synchronous>, transform_indices = @transform_8, window_bounds = array<i64: 3, 1>}, {transform_indices = @transform_9, window_bounds = array<i64: 1, 3, 128>}]} {
    %c0 = arith.constant 0 : index
    %c0_0 = arith.constant 0 : index
    %c0_1 = arith.constant 0 : index
    %0 = vector.load %arg2[%c0, %c0_0, %c0_1] : memref<1x18x128xf32, #tpu.memory_space<vmem>>, vector<1x18x128xf32>
    %1 = vector.shape_cast %0 : vector<1x18x128xf32> to vector<18x128xf32>
    %c0_2 = arith.constant 0 : index
    %c0_3 = arith.constant 0 : index
    %2 = vector.load %arg3[%c0_2, %c0_3] : memref<32x18xf32, #tpu.memory_space<vmem>>, vector<32x18xf32>
    %cst = arith.constant dense<0.000000e+00> : vector<32x128xf32>
    %3 = tpu.matmul %2, %1, %cst {dimension_numbers = #tpu.dot_dimension_numbers<[1], [0], [0], [1], [0, 0, 1, 1], [], []>} : vector<32x18xf32>, vector<18x128xf32>, vector<32x128xf32> -> vector<32x128xf32>
    %c0_4 = arith.constant 0 : index
    %c0_5 = arith.constant 0 : index
    %4 = vector.load %arg4[%c0_4, %c0_5] : memref<32x1xf32, #tpu.memory_space<vmem>>, vector<32x1xf32>
    %5 = vector.broadcast %4 : vector<32x1xf32> to vector<32x128xf32>
    %6 = arith.addf %3, %5 : vector<32x128xf32>
    %cst_6 = arith.constant 0.000000e+00 : f32
    %7 = vector.broadcast %cst_6 : f32 to vector<32x128xf32>
    %8 = arith.cmpf ogt, %6, %7 : vector<32x128xf32>
    %cst_7 = arith.constant 0.00999999977 : f32
    %9 = vector.broadcast %cst_7 : f32 to vector<32x128xf32>
    %10 = arith.mulf %9, %6 : vector<32x128xf32>
    %11 = arith.select %8, %6, %10 : vector<32x128xi1>, vector<32x128xf32>
    %c0_8 = arith.constant 0 : index
    %c0_9 = arith.constant 0 : index
    %12 = vector.load %arg5[%c0_8, %c0_9] : memref<32x32xf32, #tpu.memory_space<vmem>>, vector<32x32xf32>
    %cst_10 = arith.constant dense<0.000000e+00> : vector<32x128xf32>
    %13 = tpu.matmul %12, %11, %cst_10 {dimension_numbers = #tpu.dot_dimension_numbers<[1], [0], [0], [1], [0, 0, 1, 1], [], []>} : vector<32x32xf32>, vector<32x128xf32>, vector<32x128xf32> -> vector<32x128xf32>
    %c0_11 = arith.constant 0 : index
    %c0_12 = arith.constant 0 : index
    %14 = vector.load %arg6[%c0_11, %c0_12] : memref<32x1xf32, #tpu.memory_space<vmem>>, vector<32x1xf32>
    %15 = vector.broadcast %14 : vector<32x1xf32> to vector<32x128xf32>
    %16 = arith.addf %13, %15 : vector<32x128xf32>
    %cst_13 = arith.constant 0.000000e+00 : f32
    %17 = vector.broadcast %cst_13 : f32 to vector<32x128xf32>
    %18 = arith.cmpf ogt, %16, %17 : vector<32x128xf32>
    %cst_14 = arith.constant 0.00999999977 : f32
    %19 = vector.broadcast %cst_14 : f32 to vector<32x128xf32>
    %20 = arith.mulf %19, %16 : vector<32x128xf32>
    %21 = arith.select %18, %16, %20 : vector<32x128xi1>, vector<32x128xf32>
    %c0_15 = arith.constant 0 : index
    %c0_16 = arith.constant 0 : index
    %22 = vector.load %arg7[%c0_15, %c0_16] : memref<32x32xf32, #tpu.memory_space<vmem>>, vector<32x32xf32>
    %cst_17 = arith.constant dense<0.000000e+00> : vector<32x128xf32>
    %23 = tpu.matmul %22, %21, %cst_17 {dimension_numbers = #tpu.dot_dimension_numbers<[1], [0], [0], [1], [0, 0, 1, 1], [], []>} : vector<32x32xf32>, vector<32x128xf32>, vector<32x128xf32> -> vector<32x128xf32>
    %c0_18 = arith.constant 0 : index
    %c0_19 = arith.constant 0 : index
    %24 = vector.load %arg8[%c0_18, %c0_19] : memref<32x1xf32, #tpu.memory_space<vmem>>, vector<32x1xf32>
    %25 = vector.broadcast %24 : vector<32x1xf32> to vector<32x128xf32>
    %26 = arith.addf %23, %25 : vector<32x128xf32>
    %cst_20 = arith.constant 0.000000e+00 : f32
    %27 = vector.broadcast %cst_20 : f32 to vector<32x128xf32>
    %28 = arith.cmpf ogt, %26, %27 : vector<32x128xf32>
    %cst_21 = arith.constant 0.00999999977 : f32
    %29 = vector.broadcast %cst_21 : f32 to vector<32x128xf32>
    %30 = arith.mulf %29, %26 : vector<32x128xf32>
    %31 = arith.select %28, %26, %30 : vector<32x128xi1>, vector<32x128xf32>
    %c0_22 = arith.constant 0 : index
    %c0_23 = arith.constant 0 : index
    %32 = vector.load %arg9[%c0_22, %c0_23] : memref<3x32xf32, #tpu.memory_space<vmem>>, vector<3x32xf32>
    %cst_24 = arith.constant dense<0.000000e+00> : vector<3x128xf32>
    %33 = tpu.matmul %32, %31, %cst_24 {dimension_numbers = #tpu.dot_dimension_numbers<[1], [0], [0], [1], [0, 0, 1, 1], [], []>} : vector<3x32xf32>, vector<32x128xf32>, vector<3x128xf32> -> vector<3x128xf32>
    %c0_25 = arith.constant 0 : index
    %c0_26 = arith.constant 0 : index
    %34 = vector.load %arg10[%c0_25, %c0_26] : memref<3x1xf32, #tpu.memory_space<vmem>>, vector<3x1xf32>
    %35 = vector.broadcast %34 : vector<3x1xf32> to vector<3x128xf32>
    %36 = arith.addf %33, %35 : vector<3x128xf32>
    %c0_27 = arith.constant 0 : index
    %c0_28 = arith.constant 0 : index
    %c0_29 = arith.constant 0 : index
    %37 = vector.load %arg11[%c0_27, %c0_28, %c0_29] : memref<1x3x128xf32, #tpu.memory_space<vmem>>, vector<1x3x128xf32>
    %38 = vector.shape_cast %37 : vector<1x3x128xf32> to vector<3x128xf32>
    %39 = vector.shape_cast %36 : vector<3x128xf32> to vector<1x3x128xf32>
    tpu.vector_store %arg11[%c0_27, %c0_28, %c0_29], %39 {strides = array<i32>} : memref<1x3x128xf32, #tpu.memory_space<vmem>>, vector<1x3x128xf32>,
    return
  }
  func.func @transform_0(%arg0: i32, %arg1: i32) -> (i32, i32, i32) {
    %c0_i32 = arith.constant 0 : i32
    %c0_i32_0 = arith.constant 0 : i32
    return %arg0, %c0_i32, %arg1 : i32, i32, i32
  }
  func.func @transform_1(%arg0: i32, %arg1: i32) -> (i32, i32) {
    %c0_i32 = arith.constant 0 : i32
    %c0_i32_0 = arith.constant 0 : i32
    %c0_i32_1 = arith.constant 0 : i32
    return %c0_i32, %c0_i32_0 : i32, i32
  }
  func.func @transform_2(%arg0: i32, %arg1: i32) -> (i32, i32) {
    %c0_i32 = arith.constant 0 : i32
    %c0_i32_0 = arith.constant 0 : i32
    %c0_i32_1 = arith.constant 0 : i32
    return %c0_i32, %c0_i32_0 : i32, i32
  }
  func.func @transform_3(%arg0: i32, %arg1: i32) -> (i32, i32) {
    %c0_i32 = arith.constant 0 : i32
    %c0_i32_0 = arith.constant 0 : i32
    %c0_i32_1 = arith.constant 0 : i32
    return %c0_i32, %c0_i32_0 : i32, i32
  }
  func.func @transform_4(%arg0: i32, %arg1: i32) -> (i32, i32) {
    %c0_i32 = arith.constant 0 : i32
    %c0_i32_0 = arith.constant 0 : i32
    %c0_i32_1 = arith.constant 0 : i32
    return %c0_i32, %c0_i32_0 : i32, i32
  }
  func.func @transform_5(%arg0: i32, %arg1: i32) -> (i32, i32) {
    %c0_i32 = arith.constant 0 : i32
    %c0_i32_0 = arith.constant 0 : i32
    %c0_i32_1 = arith.constant 0 : i32
    return %c0_i32, %c0_i32_0 : i32, i32
  }
  func.func @transform_6(%arg0: i32, %arg1: i32) -> (i32, i32) {
    %c0_i32 = arith.constant 0 : i32
    %c0_i32_0 = arith.constant 0 : i32
    %c0_i32_1 = arith.constant 0 : i32
    return %c0_i32, %c0_i32_0 : i32, i32
  }
  func.func @transform_7(%arg0: i32, %arg1: i32) -> (i32, i32) {
    %c0_i32 = arith.constant 0 : i32
    %c0_i32_0 = arith.constant 0 : i32
    %c0_i32_1 = arith.constant 0 : i32
    return %c0_i32, %c0_i32_0 : i32, i32
  }
  func.func @transform_8(%arg0: i32, %arg1: i32) -> (i32, i32) {
    %c0_i32 = arith.constant 0 : i32
    %c0_i32_0 = arith.constant 0 : i32
    %c0_i32_1 = arith.constant 0 : i32
    return %c0_i32, %c0_i32_0 : i32, i32
  }
  func.func @transform_9(%arg0: i32, %arg1: i32) -> (i32, i32, i32) {
    %c0_i32 = arith.constant 0 : i32
    %c0_i32_0 = arith.constant 0 : i32
    return %arg0, %c0_i32, %arg1 : i32, i32, i32
  }
}

</mosaic_0001>

<bundles_post_ra>
// kernel: tpu_custom_call.1
= control target key start
LH: loop header
LB: loop body
LE: loop exit
PB: predicated region body
PF: predicated region fallthrough
CT: control target
= control target key end

     0   :  { %s1292_s30 = smov 0   ;;  %s1294_s10 = smov 0   ;;  %s1474_s0 = inlined_call_operand.vmem [shape: f32[2,18,256], index: 0, kind: input, shape index: {}]   ;;  %s1475_s1 = inlined_call_operand.vmem [shape: f32[32,18], index: 1, kind: input, shape index: {}]   ;;  %s1476_s2 = inlined_call_operand.vmem [shape: f32[32,1], index: 2, kind: input, shape index: {}]   ;;  %s1477_s3 = inlined_call_operand.vmem [shape: f32[32,32], index: 3, kind: input, shape index: {}]   ;;  %s1478_s4 = inlined_call_operand.vmem [shape: f32[32,1], index: 4, kind: input, shape index: {}]   ;;  %s1479_s5 = inlined_call_operand.vmem [shape: f32[32,32], index: 5, kind: input, shape index: {}]   ;;  %s1480_s6 = inlined_call_operand.vmem [shape: f32[32,1], index: 6, kind: input, shape index: {}]   ;;  %s1481_s7 = inlined_call_operand.vmem [shape: f32[3,32], index: 7, kind: input, shape index: {}]   ;;  %s1482_s8 = inlined_call_operand.vmem [shape: f32[3,1], index: 8, kind: input, shape index: {}]   ;;  %s1483_s9 = inlined_call_operand.vmem [shape: f32[2,3,256], index: 9, kind: output, shape index: {}]  }
   0x1   :  { %s1296_s11 = smov 0   ;;  %s1298_s12 = smov 0  }
   0x2   :  { %s1300_s13 = smov 0   ;;  %s1302_s14 = smov 0  }
   0x3   :  { %s1304_s15 = smov 0  }
   0x4 LB: > { %s28_s16 = sadd.s32 1, %s1228_s13  ;;  %s31_s17 = sadd.s32 1, %s1232_s14  ;;  %s1236_s15 = sphi %s1304_s15, %s19_s15   ;;  %s1232_s14 = sphi %s1302_s14, %s1489_s14   ;;  %s1228_s13 = sphi %s1300_s13, %s1488_s13   ;;  %s1224_s12 = sphi %s1298_s12, %s1487_s12   ;;  %s1220_s11 = sphi %s1296_s11, %s1486_s11   ;;  %s1216_s10 = sphi %s1294_s10, %s1485_s10   ;;  %s1212_s30 = sphi %s1292_s30, %s1484_s30  }
   0x5   : > { %p29_p0 = scmp.ge.s32.totalorder %s28_s16, 2  ;;  %p47_p1 = scmp.ne.s32.totalorder %s1216_s10, %s1212_s30 }
   0x6   : > { %p48_p2 = scmp.eq.s32.totalorder %s1236_s15, 0  ;;  %s40_s21 = sadd.s32 1, %s1216_s10 }
   0x7   : > { %s1491_s16 = smov (%p29_p0, %s28_s16), 0  ;;  %s1493_s17 = smov (!%p29_p0, %s31_s17), %s1232_s14 }
   0x8   : > { %p49_p3 = por %p48_p2, %p47_p1  ;;  %p33_p4 = scmp.ge.s32.totalorder %s1493_s17, 2 }
   0x9   : > { %s36_s18 = ssub.s32 %s1228_s13, %s1491_s16  ;;  %p991_p6 = scmp.ge.s32.totalorder %s1236_s15, 4 }
   0xa   : > { %s1495_s17 = smov (%p33_p4, %s1493_s17), 0 }
   0xb   : > { %s35_s19 = ssub.s32 %s1232_s14, %s1495_s17  ;;  %293 = sbr.rel (%p991_p6) target bundleno = 27 (0x1b), region = 48 }
   0xc   : > { %s37_s20 = sor.u32 %s36_s18, %s35_s19 }
   0xd   : > { %p38_p5 = scmp.eq.s32.totalorder %s37_s20, 0 }
   0xf   : > { %s1343_s22 = scalar_select %p38_p5, %s1216_s10, %s40_s21  }
  0x12   : > { %296 = sbr.rel (!%p49_p3) target bundleno = 27 (0x1b), region = 52  ;;  %s298_s23 = sand.u32 (%p49_p3), 1, %s1216_s10  }
  0x13   : > { %s1118_s24 = smul.u32 (%p49_p3), 6, %s1232_s14 }
  0x14   : > { %s1117_s25 = smul.u32 (%p49_p3), 24, %s298_s23 }
  0x15   : > { %s302_s26 = sadd.s32 (%p49_p3), %s1228_s13, %s1118_s24 }
  0x16   : > { %s992_s27 = sshll.u32 (%p49_p3), %s302_s26, 3  ;;  %s300_s19 = scalar_lea.vmem (%p49_p3), [#allocation2], %s1117_s25 }
  0x17   : > { %s304_s18 = scalar_lea.vmem (%p49_p3), %s1474_s0, %s992_s27 }
  0x18   : > { %v336_v0 = vld [vmem:[%s304_s18] sm:$0xff] (%p49_p3)  ;;  %v338_v1 = vld [vmem:[%s304_s18 + $0x10] sm:$0xff] (%p49_p3) }
  0x19   : > { %v340_v2 = vld [vmem:[%s304_s18 + $0x20] sm:$0xff]  ;;  %337 = vst [vmem:[%s300_s19] sm:$0xff] %v336_v0  ;;  %339 = vst [vmem:[%s300_s19 + $0x8] sm:$0xff] %v338_v1 }
  0x1a   : > { %341 = vst [vmem:[%s300_s19 + $0x10] sm:$0xff] %v340_v2 }
  0x1b PF: > { %p993_p7 = scmp.ge.s32.totalorder %s1236_s15, 1  ;;  %p346_p8 = scmp.lt.s32.totalorder %s1236_s15, 5 }
  0x1d   : > { %p347_p9 = pnand %p993_p7, %p346_p8 }
  0x1e   : > { %s353_s20 = sand.u32 (!%p347_p9), 1, %s1212_s30   ;;  %v402_v3 = vld [vmem:[%s1475_s1] sm:$0xff] (!%p347_p9)  ;;  %vm430_vm0 = vcmask (!%p347_p9), 146432   ;;  %v1238_v5 = vmov (!%p347_p9), 0   ;;  %v408_v6 = vld [vmem:[%s1476_s2 + $0x10] sm:$0xff] (!%p347_p9)  ;;  %v407_v9 = vld [vmem:[%s1476_s2 + $0x8] sm:$0xff] (!%p347_p9) }
  0x1f   : > { %350 = sbr.rel (%p347_p9) target bundleno = 942 (0x3ae), region = 90  ;;  %1046 = vmatprep.mubr.msk.f32.mxu0 (!%p347_p9), %vm430_vm0, %v402_v3  ;;  %v406_v4 = vld [vmem:[%s1476_s2] sm:$0xff] (!%p347_p9)  ;;  %1180 = vset.pattern.permute.xlu0 (!%p347_p9), %v1238_v5  ;;  %v409_v11 = vld [vmem:[%s1476_s2 + $0x18] sm:$0xff] (!%p347_p9)  ;;  %vm443_vm1 = vcmask (!%p347_p9), 1041408   ;;  %v549_v14 = vld [vmem:[%s1478_s4 + $0x8] sm:$0xff] (!%p347_p9)  ;;  %vm572_vm2 = vcmask (!%p347_p9), 261120  }
  0x20   : > { %s1119_s24 = smul.u32 (!%p347_p9), 24, %s353_s20  ;;  %1181 = vset.pattern.permute.xlu1 (!%p347_p9), %v1238_v5  ;;  %412 = vperm.xlu0 (!%p347_p9), %1180, %v406_v4   ;;  %v548_v13 = vld [vmem:[%s1478_s4] sm:$0xff] (!%p347_p9)  ;;  %v403_v15 = vld [vmem:[%s1475_s1 + $0x8] sm:$0xff] (!%p347_p9)  ;;  %v404_v16 = vld [vmem:[%s1475_s1 + $0x10] sm:$0xff] (!%p347_p9)  ;;  %vm1240_vm11 = vmmov (!%p347_p9), 0   ;;  %p391_p10 = scmp.lt.s32.totalorder (!%p347_p9), %s1224_s12, 1 }
  0x21   : > { %422 = vperm.xlu1 (!%p347_p9), %1181, %v408_v6   ;;  %v550_v17 = vld [vmem:[%s1478_s4 + $0x10] sm:$0xff] (!%p347_p9)  ;;  %v551_v18 = vld [vmem:[%s1478_s4 + $0x18] sm:$0xff] (!%p347_p9)  ;;  %v686_v20 = vld [vmem:[%s1480_s6] sm:$0xff] (!%p347_p9)  ;;  %p393_p11 = scmp.lt.s32.totalorder (!%p347_p9), %s1220_s11, 1 }
  0x22   : > { %s355_s30 = scalar_lea.vmem (!%p347_p9), [#allocation2], %s1119_s24  ;;  %v405_v19 = vld [vmem:[%s1475_s1 + $0x18] sm:$0xff] (!%p347_p9)  ;;  %v687_v21 = vld [vmem:[%s1480_s6 + $0x8] sm:$0xff] (!%p347_p9)  ;;  %v688_v22 = vld [vmem:[%s1480_s6 + $0x10] sm:$0xff] (!%p347_p9) }
  0x23   : > { %v399_v7 = vld [vmem:[%s355_s30] sm:$0xff] (!%p347_p9)  ;;  %v400_v8 = vld [vmem:[%s355_s30 + $0x8] sm:$0xff] (!%p347_p9)  ;;  %v401_v12 = vld [vmem:[%s355_s30 + $0x10] sm:$0x3] (!%p347_p9) }
  0x24   : > { %v1091_v10 = vpack.c.bf16 (!%p347_p9), %v400_v8, %v399_v7  ;;  %417 = vperm.xlu0 (!%p347_p9), %1180, %v407_v9   ;;  %v689_v23 = vld [vmem:[%s1480_s6 + $0x18] sm:$0xff] (!%p347_p9)  ;;  %v820_v24 = vld [vmem:[%s1482_s8] sm:$0x7] (!%p347_p9)  ;;  %v545_v48 = vld [vmem:[%s1477_s3 + $0x8] sm:$0xff] (!%p347_p9) }
  0x25   : > { %427 = vperm.xlu1 (!%p347_p9), %1181, %v409_v11   ;;  %v544_v25 = vld [vmem:[%s1477_s3] sm:$0xff] (!%p347_p9)  ;;  %v546_v49 = vld [vmem:[%s1477_s3 + $0x10] sm:$0xff] (!%p347_p9)  ;;  %v547_v50 = vld [vmem:[%s1477_s3 + $0x18] sm:$0xff] (!%p347_p9) }
  0x26   : > { %1092 = vmatprep.subr.bf16.mxu0 %v1091_v10  ;;  %1060 = vmatprep.mubr.msk.f32.mxu1 %vm572_vm2, %v544_v25  ;;  %v682_v51 = vld [vmem:[%s1479_s5] sm:$0xff]  ;;  %v684_v11 = vld [vmem:[%s1479_s5 + $0x10] sm:$0xff]  ;;  %s1497_s12 = smov (!%p391_p10, %s1224_s12), 1  ;;  %s1499_s11 = smov (!%p393_p11, %s1220_s11), 1 }
  0x27   : > { %1094 = vmatpush3.bf16.msra.mxu0 %v1091_v10  ;;  %v683_v10 = vld [vmem:[%s1479_s5 + $0x8] sm:$0xff]  ;;  %s994_s28 = sshll.u32 %s1497_s12, 1 }
  0x28   : > { %1044 = vmatprep.subr.msk.mxu0 %vm443_vm1, %v401_v12  ;;  %554 = vperm.xlu0 %1180, %v548_v13   ;;  %v1239_v13 = vmov 0.0|0.0   ;;  %s396_s30 = sadd.s32 %s994_s28, %s1499_s11 }
  0x29   : > { %559 = vperm.xlu1 %1181, %v549_v14   ;;  %v1241_v14 = vmov 0.0   ;;  %s995_s29 = sshll.u32 %s396_s30, 2 }
  0x2a   : > { %s398_s20 = scalar_lea.vmem %s1483_s9, %s995_s29 }
  0x2b   : > { %1045 = vmatpush3.msk.msra.mxu0 %vm443_vm1, %v401_v12  ;;  %v685_v12 = vld [vmem:[%s1479_s5 + $0x18] sm:$0xff] }
  0x2c   : > { %1047 = vmatmul.mubr.msk.f32.vlgmr.msra.gmra.mrb[0].mxu0 %vm430_vm0, %v403_v15  ;;  %564 = vperm.xlu0 %1180, %v550_v17  }
  0x2d   : > { %1049 = vmatprep.mubr.msk.f32.mxu0 %vm430_vm0, %v404_v16  ;;  %569 = vperm.xlu1 %1181, %v551_v18  }
  0x30   : > { %1050 = vmatmul.mubr.msk.f32.gmra.mrb[2].mxu0 %vm430_vm0, %v405_v19  ;;  %692 = vperm.xlu0 %1180, %v686_v20  }
  0x31   : > { %697 = vperm.xlu1 %1181, %v687_v21   ;;  %1074 = vmatprep.mubr.msk.f32.mxu0 %vm572_vm2, %v682_v51 }
  0x34   : > { %702 = vperm.xlu0 %1180, %v688_v22  }
  0x35   : > { %707 = vperm.xlu1 %1181, %v689_v23  }
  0x38   : > { %823 = vperm.xlu0 %1180, %v820_v24  }
  0x9f   : > { %v413_v26 = vpop.permute.xlu0 %412 }
  0xa0   : > { %v423_v27 = vpop.permute.xlu1 %422 }
  0xa3   : > { %v418_v28 = vpop.permute.xlu0 %417 }
  0xa4   : > { %v428_v34 = vpop.permute.xlu1 %427 }
  0xa7   : > { %v555_v53 = vpop.permute.xlu0 %554 }
  0xa8   : > { %v560_v52 = vpop.permute.xlu1 %559 }
  0xab   : > { %v565_v62 = vpop.permute.xlu0 %564 }
  0xac   : > { %v570_v59 = vpop.permute.xlu1 %569 }
  0xaf   : > { %v693_v16 = vpop.permute.xlu0 %692 }
  0xb0   : > { %v698_v15 = vpop.permute.xlu1 %697 }
  0xb3   : > { %v703_v25 = vpop.permute.xlu0 %702 }
  0xb4   : > { %v708_v22 = vpop.permute.xlu1 %707 }
  0xff   : > { %v1048_v29 = vpop.f32.mrb[0].mxu0 }
 0x100   : > { %v519_v30 = vadd.f32 %v1048_v29, %v418_v28  ;;  %v513_v31 = vpop.f32.mrb[1].mxu0 }
 0x101   : > { %v514_v32 = vadd.f32 %v513_v31, %v413_v26 }
 0x102   : > { %v537_v33 = vmul.f32 0.01, %v519_v30  ;;  %vm533_vm3 = vcmp.gt.f32.partialorder %v519_v30, 0.0 }
 0x103   : > { %v536_v35 = vmul.f32 0.01, %v514_v32  ;;  %v1051_v36 = vpop.f32.mrb[2].mxu0  ;;  %vm532_vm4 = vcmp.gt.f32.partialorder %v514_v32, 0.0 }
 0x104   : > { %v529_v37 = vadd.f32 %v1051_v36, %v428_v34  ;;  %v523_v38 = vpop.f32.mrb[3].mxu0  ;;  %v541_v39 = vsel %vm533_vm3, %v519_v30, %v537_v33 }
 0x105   : > { %v524_v40 = vadd.f32 %v523_v38, %v423_v27  ;;  %v540_v41 = vsel %vm532_vm4, %v514_v32, %v536_v35  ;;  %v824_v38 = vpop.permute.xlu0 %823 }
 0x106   : > { %vm535_vm5 = vcmp.gt.f32.partialorder %v529_v37, 0.0  ;;  %v539_v42 = vmul.f32 0.01, %v529_v37  ;;  %v1095_v43 = vpack.c.bf16 %v541_v39, %v540_v41 }
 0x107   : > { %vm534_vm6 = vcmp.gt.f32.partialorder %v524_v40, 0.0  ;;  %v538_v44 = vmul.f32 0.01, %v524_v40 }
 0x108   : > { %1096 = vmatprep.subr.bf16.mxu1 %v1095_v43  ;;  %v543_v45 = vsel %vm535_vm5, %v529_v37, %v539_v42  ;;  %v819_v37 = vld [vmem:[%s1481_s7] sm:$0x7] }
 0x109   : > { %1098 = vmatpush3.bf16.msra.mxu1 %v1095_v43  ;;  %v542_v46 = vsel %vm534_vm6, %v524_v40, %v538_v44 }
 0x10a   : > { %v1099_v47 = vpack.c.bf16 %v543_v45, %v542_v46 }
 0x10c   : > { %1100 = vmatprep.subr.bf16.mxu1 %v1099_v47 }
 0x10d   : > { %1102 = vmatpush3.bf16.msra.mxu1 %v1099_v47 }
 0x10e   : > { %1111 = vmatprep.subr.bf16.mxu1 %v1239_v13 }
 0x110   : > { %1061 = vmatmul.mubr.msk.f32.vlgmr.msra.gmra.mrb[0].mxu1 %vm572_vm2, %v545_v48 }
 0x111   : > { %1063 = vmatprep.mubr.msk.f32.mxu1 %vm572_vm2, %v546_v49 }
 0x114   : > { %1064 = vmatmul.mubr.msk.f32.gmra.mrb[2].mxu1 %vm572_vm2, %v547_v50 }
 0x115   : > { %1088 = vmatprep.mubr.msk.f32.mxu1 %vm1240_vm11, %v1241_v14 }
 0x1e3   : > { %v1062_v54 = vpop.f32.mrb[0].mxu1 }
 0x1e4   : > { %v657_v55 = vadd.f32 %v1062_v54, %v560_v52  ;;  %v651_v56 = vpop.f32.mrb[1].mxu1 }
 0x1e5   : > { %v652_v57 = vadd.f32 %v651_v56, %v555_v53 }
 0x1e6   : > { %vm671_vm7 = vcmp.gt.f32.partialorder %v657_v55, 0.0  ;;  %v675_v58 = vmul.f32 0.01, %v657_v55 }
 0x1e7   : > { %vm670_vm8 = vcmp.gt.f32.partialorder %v652_v57, 0.0  ;;  %v674_v60 = vmul.f32 0.01, %v652_v57  ;;  %v1065_v61 = vpop.f32.mrb[2].mxu1 }
 0x1e8   : > { %v667_v63 = vadd.f32 %v1065_v61, %v570_v59  ;;  %v661_v0 = vpop.f32.mrb[3].mxu1  ;;  %v679_v1 = vsel %vm671_vm7, %v657_v55, %v675_v58 }
 0x1e9   : > { %v662_v2 = vadd.f32 %v661_v0, %v565_v62  ;;  %v678_v3 = vsel %vm670_vm8, %v652_v57, %v674_v60 }
 0x1ea   : > { %vm673_vm9 = vcmp.gt.f32.partialorder %v667_v63, 0.0  ;;  %v677_v4 = vmul.f32 0.01, %v667_v63  ;;  %v1103_v5 = vpack.c.bf16 %v679_v1, %v678_v3 }
 0x1eb   : > { %vm672_vm10 = vcmp.gt.f32.partialorder %v662_v2, 0.0  ;;  %v676_v6 = vmul.f32 0.01, %v662_v2 }
 0x1ec   : > { %1104 = vmatprep.subr.bf16.mxu0 %v1103_v5  ;;  %v681_v7 = vsel %vm673_vm9, %v667_v63, %v677_v4 }
 0x1ed   : > { %1106 = vmatpush3.bf16.msra.mxu0 %v1103_v5  ;;  %v680_v8 = vsel %vm672_vm10, %v662_v2, %v676_v6 }
 0x1ee   : > { %v1107_v9 = vpack.c.bf16 %v681_v7, %v680_v8 }
 0x1f0   : > { %1108 = vmatprep.subr.bf16.mxu0 %v1107_v9 }
 0x1f1   : > { %1110 = vmatpush3.bf16.msra.mxu0 %v1107_v9 }
 0x1f4   : > { %1075 = vmatmul.mubr.msk.f32.vlgmr.msra.gmra.mrb[4].mxu0 %vm572_vm2, %v683_v10 }
 0x1f5   : > { %1077 = vmatprep.mubr.msk.f32.mxu0 %vm572_vm2, %v684_v11 }
 0x1f8   : > { %1078 = vmatmul.mubr.msk.f32.gmra.mrb[6].mxu0 %vm572_vm2, %v685_v12 }
 0x2c7   : > { %v1076_v17 = vpop.f32.mrb[4].mxu0 }
 0x2c8   : > { %v794_v18 = vadd.f32 %v1076_v17, %v698_v15  ;;  %v788_v19 = vpop.f32.mrb[5].mxu0 }
 0x2c9   : > { %v789_v20 = vadd.f32 %v788_v19, %v693_v16 }
 0x2ca   : > { %vm808_vm12 = vcmp.gt.f32.partialorder %v794_v18, 0.0  ;;  %v812_v21 = vmul.f32 0.01, %v794_v18 }
 0x2cb   : > { %vm807_vm13 = vcmp.gt.f32.partialorder %v789_v20, 0.0  ;;  %v811_v23 = vmul.f32 0.01, %v789_v20  ;;  %v1079_v24 = vpop.f32.mrb[6].mxu0 }
 0x2cc   : > { %v816_v26 = vsel %vm808_vm12, %v794_v18, %v812_v21  ;;  %v804_v27 = vadd.f32 %v1079_v24, %v708_v22  ;;  %v798_v28 = vpop.f32.mrb[7].mxu0 }
 0x2cd   : > { %v815_v29 = vsel %vm807_vm13, %v789_v20, %v811_v23  ;;  %v799_v30 = vadd.f32 %v798_v28, %v703_v25 }
 0x2ce   : > { %v1112_v31 = vpack.c.bf16 %v816_v26, %v815_v29  ;;  %vm810_vm14 = vcmp.gt.f32.partialorder %v804_v27, 0.0  ;;  %v814_v32 = vmul.f32 0.01, %v804_v27 }
 0x2cf   : > { %vm809_vm15 = vcmp.gt.f32.partialorder %v799_v30, 0.0  ;;  %v813_v33 = vmul.f32 0.01, %v799_v30 }
 0x2d0   : > { %v818_v34 = vsel %vm810_vm14, %v804_v27, %v814_v32  ;;  %1113 = vmatpush3.bf16.msra.mxu1 %v1112_v31 }
 0x2d1   : > { %v817_v35 = vsel %vm809_vm15, %v799_v30, %v813_v33  ;;  %1114 = vmatprep.subr.bf16.mxu1 %v1239_v13 }
 0x2d2   : > { %v1115_v36 = vpack.c.bf16 %v818_v34, %v817_v35 }
 0x2d4   : > { %1116 = vmatpush3.bf16.msra.mxu1 %v1115_v36 }
 0x2d7   : > { %1089 = vmatmul.mubr.msk.f32.vlgmr.msra.gmra.mrb[4].mxu1 %vm572_vm2, %v819_v37 }
 0x3aa   : > { %v895_v39 = vpop.f32.mrb[4].mxu1 }
 0x3ab   : > { %v896_v40 = vadd.f32 %v895_v39, %v824_v38  ;;  %v1090_v41 = vpop.f32.mrb[5].mxu1 }
 0x3ad   : > { %899 = vst [vmem:[%s398_s20] sm:$0x7] %v896_v40 }
 0x3ae PF: > { %s19_s15 = sadd.s32 1, %s1236_s15   ;;  %s1484_s30 = smov %s1216_s10 }
 0x3af   : > { %p16_p12 = scmp.ge.s32.totalorder %s19_s15, 6   ;;  %s1485_s10 = smov %s1343_s22 }
 0x3b0   : > { %s1486_s11 = smov %s1228_s13  ;;  %s1487_s12 = smov %s1232_s14 }
 0x3b1   : > { %s1488_s13 = smov %s1491_s16  ;;  %s1489_s14 = smov %s1495_s17 }
 0x3b2   :  { %18 = sbr.rel (!%p16_p12) target bundleno = 4 (0x4), region = 129 }

</bundles_post_ra>
